<compile_context>
chip_gen: v7x
topology: tpu7x:2x2x1
jax: 0.10.0
libtpu: 0.0.40
codegen_flags: <defaults>
</compile_context>

<pallas_src>
import jax
import jax.numpy as jnp
from jax.experimental import pallas as pl
from jax.experimental.pallas import tpu as pltpu


# ----------------------------------------------------------------------------
# Kernels
# ----------------------------------------------------------------------------
def _blockwise_kernel_f32_out(x_ref, w_ref, o_ref):
    """f32 output: accumulate directly into the k-resident output block.

    x_ref: [tm, tk], w_ref: [tk, tn], o_ref: [tm, tn] (index_map constant in k).
    """
    k = pl.program_id(2)

    @pl.when(k == 0)
    def _():
        o_ref[...] = jnp.zeros_like(o_ref)

    o_ref[...] += jnp.dot(x_ref[...], w_ref[...],
                          preferred_element_type=jnp.float32)


def _blockwise_kernel_acc(x_ref, w_ref, o_ref, acc_ref):
    """Non-f32 output: f32 VMEM accumulator, cast once on the last K step."""
    k = pl.program_id(2)

    @pl.when(k == 0)
    def _():
        acc_ref[...] = jnp.zeros_like(acc_ref)

    acc_ref[...] += jnp.dot(x_ref[...], w_ref[...],
                            preferred_element_type=jnp.float32)

    @pl.when(k == pl.num_programs(2) - 1)
    def _():
        o_ref[...] = acc_ref[...].astype(o_ref.dtype)


# ----------------------------------------------------------------------------
# Helpers
# ----------------------------------------------------------------------------
def _round_up(v, m):
    return ((v + m - 1) // m) * m


def _vmem_capacity_bytes():
    """Physical VMEM per core; conservative 64 MiB (v7x) fallback."""
    try:
        info = pltpu.get_tpu_info()
        cap = int(getattr(info, "vmem_capacity_bytes", 0) or 0)
        if cap > 0:
            return cap
    except Exception:
        pass
    return 64 * 1024 * 1024


def _choose_tk(K, tk_max):
    """Pick (tk, K_pad): tk is an exact divisor of K_pad, lane-aligned
    (multiple of 128) or the full dim, bounded by tk_max, preferring
    256-multiples.  If K has no suitable divisor, K is zero-padded (the extra
    zero columns contribute nothing to the sum)."""
    if K <= tk_max:
        return K, K          # single K step; full-dim block is always legal

    def _best(kp):
        best = None
        for cand in range(128, tk_max + 1, 128):
            if kp % cand:
                continue
            if best is None or (cand % 256 == 0, cand) > (best % 256 == 0, best):
                best = cand
        return best

    tk = _best(K)
    if tk is not None:
        return tk, K
    pad_mod = 256 if tk_max >= 256 else 128
    K_pad = _round_up(K, pad_mod)
    return _best(K_pad), K_pad


def _make_in_spec(shape, index_map, buffer_depth):
    """BlockSpec with optional deeper pipelining; falls back cleanly if the
    installed JAX does not accept pipeline_mode."""
    if buffer_depth is not None and buffer_depth > 2:
        try:
            return pl.BlockSpec(shape, index_map,
                                pipeline_mode=pl.Buffered(buffer_depth))
        except Exception:
            pass
    return pl.BlockSpec(shape, index_map)


# ----------------------------------------------------------------------------
# Wrapper
# ----------------------------------------------------------------------------
def linear_with_grouped_conv(x, weight, block_size, *, mxu_dtype=None,
                             tm_max=None, tn_max=None, tk_max=None,
                             buffer_depth=3):
    """Pallas equivalent of LinearWithGroupedConv.forward.

    x      : [batch, seq, in_feature]
    weight : [out_feature, in_feature]   (original nn.Linear weight)
    returns: [batch, seq, out_feature]

    mxu_dtype: optional (e.g. jnp.bfloat16) — cast MXU operands once in the
    wrapper while keeping f32 accumulation; leave None for exact f32 math.
    """
    batch, seq, in_feature = x.shape
    out_feature, w_in = weight.shape
    assert w_in == in_feature
    assert in_feature % block_size == 0, (
        f"in_feature:{in_feature} should be divisible by block_size:{block_size}")
    # block_size/num_blocks only describe how the PyTorch module decomposes the
    # Linear; the grouped conv + block-sum is exactly x @ w.T, so the reduction
    # tile (tk) is chosen independently of block_size.

    out_dtype = x.dtype
    M = batch * seq
    x2 = x.reshape(M, in_feature)
    wT = weight.T                         # one-time transpose -> [K, N]

    if mxu_dtype is not None:
        x2 = x2.astype(mxu_dtype)
        wT = wT.astype(mxu_dtype)

    # ---- generation-aware tile maxima --------------------------------------
    vmem_cap = _vmem_capacity_bytes()
    big_vmem = vmem_cap >= 96 * 1024 * 1024          # v5e/v6e: 128 MiB; v7x: 64 MiB
    tm_max = max(8, tm_max if tm_max is not None else (1024 if big_vmem else 512))
    tn_max = max(128, tn_max if tn_max is not None else (1024 if big_vmem else 512))
    tk_max = max(128, tk_max if tk_max is not None else (1024 if big_vmem else 512))

    # ---- K (reduction) tiling: exact, lane-aligned, bounded ----------------
    tk, K_pad = _choose_tk(in_feature, tk_max)

    # ---- lane-dense output: pad N up to 128 if narrower --------------------
    N_pad = out_feature if out_feature >= 128 else 128

    if K_pad != in_feature:
        x2 = jnp.pad(x2, ((0, 0), (0, K_pad - in_feature)))
    if K_pad != in_feature or N_pad != out_feature:
        wT = jnp.pad(wT, ((0, K_pad - in_feature), (0, N_pad - out_feature)))

    # ---- M / N tiling -------------------------------------------------------
    tm = M if M <= tm_max else tm_max
    tn = N_pad if N_pad <= tn_max else tn_max

    direct_f32 = (out_dtype == jnp.float32)

    # ---- VMEM accounting (output is k-resident; inputs double-buffered) -----
    x_item = x2.dtype.itemsize
    w_item = wT.dtype.itemsize
    o_item = jnp.dtype(out_dtype).itemsize

    def _tile_bytes(tm_, tn_, tk_):
        b = 2 * tm_ * tk_ * x_item + 2 * tk_ * tn_ * w_item + tm_ * tn_ * o_item
        if not direct_f32:
            b += tm_ * tn_ * 4
        return b

    budget = int(0.6 * vmem_cap)
    # Shrink the K tile first if (user-overridden) tiles would blow the budget.
    while _tile_bytes(tm, tn, tk) > budget and tk > 128 and tk % 256 == 0:
        tk //= 2

    # ---- ensure a usable parallel axis for v7x's two TensorCores -----------
    if pl.cdiv(M, tm) == 1 and pl.cdiv(N_pad, tn) == 1:
        if tm % 16 == 0:                 # halved M tile stays sublane-aligned
            tm //= 2
        elif tn % 256 == 0:              # halved N tile stays lane-aligned
            tn //= 2

    grid = (pl.cdiv(M, tm), pl.cdiv(N_pad, tn), K_pad // tk)
    k_steps = grid[2]

    needed = _tile_bytes(tm, tn, tk)
    vmem_limit = min(int(needed * 1.25) + (24 << 20), int(0.9 * vmem_cap))
    vmem_limit = max(vmem_limit, 32 << 20)           # limit, not a reservation
    vmem_limit = min(vmem_limit, int(0.9 * vmem_cap))

    bdepth = buffer_depth if k_steps >= 3 else None
    in_specs = [
        _make_in_spec((tm, tk), lambda i, j, k: (i, k), bdepth),
        _make_in_spec((tk, tn), lambda i, j, k: (k, j), bdepth),
    ]
    out_spec = pl.BlockSpec((tm, tn), lambda i, j, k: (i, j))

    if direct_f32:
        kernel = _blockwise_kernel_f32_out
        scratch_shapes = []
    else:
        kernel = _blockwise_kernel_acc
        scratch_shapes = [pltpu.VMEM((tm, tn), jnp.float32)]

    cost = pl.CostEstimate(
        flops=2 * M * N_pad * K_pad,
        transcendentals=0,
        bytes_accessed=int(M * K_pad * x_item + K_pad * N_pad * w_item
                           + M * N_pad * o_item),
    )

    out = pl.pallas_call(
        kernel,
        out_shape=jax.ShapeDtypeStruct((M, N_pad), out_dtype),
        grid_spec=pltpu.PrefetchScalarGridSpec(
            num_scalar_prefetch=0,
            grid=grid,
            in_specs=in_specs,
            out_specs=out_spec,
            scratch_shapes=scratch_shapes,
        ),
        compiler_params=pltpu.CompilerParams(
            dimension_semantics=("parallel", "parallel", "arbitrary"),
            vmem_limit_bytes=vmem_limit,
        ),
        cost_estimate=cost,
    )(x2, wT)

    if N_pad != out_feature:
        out = out[:, :out_feature]
    return out.reshape(batch, seq, out_feature)


# ----------------------------------------------------------------------------
# Pure-JAX reference (grouped conv over blocks + block-sum == x @ w.T)
# ----------------------------------------------------------------------------
def reference(x, weight):
    return jnp.einsum("bsi,oi->bso", x, weight)


if __name__ == "__main__":
    key = jax.random.PRNGKey(0)
    k1, k2, k3, k4 = jax.random.split(key, 4)

    batch, seq = 2, 8
    block_size = 64
    in_feature = 4 * block_size          # 256 (num_blocks = 4)

    # ---- Case 1: f32, out_feature < 128 (lane-padding path), 2 K steps,
    #              degenerate M/N grid -> megacore split, direct f32 accumulate.
    out_feature = 96
    x = jax.random.normal(k1, (batch, seq, in_feature), dtype=jnp.float32)
    w = jax.random.normal(k2, (out_feature, in_feature), dtype=jnp.float32) * 0.05
    y = jax.block_until_ready(
        linear_with_grouped_conv(x, w, block_size, tk_max=128))
    y_ref = reference(x, w)
    assert y.shape == (batch, seq, out_feature)
    assert jnp.allclose(y, y_ref, atol=1e-4, rtol=1e-4), "f32 mismatch vs reference"

    # ---- Case 2: bf16 inputs/output (f32 scratch-accumulator kernel path).
    out_feature2 = 256
    xb = jax.random.normal(k3, (batch, seq, in_feature),
                           dtype=jnp.float32).astype(jnp.bfloat16)
    wb = (jax.random.normal(k4, (out_feature2, in_feature),
                            dtype=jnp.float32) * 0.05).astype(jnp.bfloat16)
    y2 = jax.block_until_ready(
        linear_with_grouped_conv(xb, wb, block_size, tk_max=128))
    y2_ref = reference(xb.astype(jnp.float32), wb.astype(jnp.float32))
    assert y2.shape == (batch, seq, out_feature2)
    assert jnp.allclose(y2.astype(jnp.float32), y2_ref, atol=2e-2, rtol=2e-2), \
        "bf16 mismatch vs reference"

    print("KERNEL_OK")
</pallas_src>

<mosaic_0001>
module attributes {stable_mosaic.version = 11 : i64} {
  func.func @_blockwise_kernel_f32_out(%arg0: i32, %arg1: i32, %arg2: i32, %arg3: memref<8x128xf32, #tpu.memory_space<vmem>>, %arg4: memref<128x128xf32, #tpu.memory_space<vmem>>, %arg5: memref<8x128xf32, #tpu.memory_space<vmem>>) attributes {dimension_semantics = [#tpu.dimension_semantics<parallel>, #tpu.dimension_semantics<parallel>, #tpu.dimension_semantics<arbitrary>], iteration_bounds = array<i64: 2, 1, 2>, scalar_prefetch = 0 : i64, scratch_operands = 0 : i64, tpu.core_type = #tpu.core_type<tc>, window_params = [{transform_indices = @transform_0, window_bounds = array<i64: 8, 128>}, {transform_indices = @transform_1, window_bounds = array<i64: 128, 128>}, {transform_indices = @transform_2, window_bounds = array<i64: 8, 128>}]} {
    %c0_i32 = arith.constant 0 : i32
    %0 = arith.cmpi eq, %arg2, %c0_i32 : i32
    %1 = arith.extui %0 : i1 to i32
    %c0_i32_0 = arith.constant 0 : i32
    %2 = arith.cmpi ne, %1, %c0_i32_0 : i32
    scf.if %2 {
      %cst_8 = arith.constant 0.000000e+00 : f32
      %9 = vector.broadcast %cst_8 : f32 to vector<8x128xf32>
      %c0_9 = arith.constant 0 : index
      %c0_10 = arith.constant 0 : index
      %10 = vector.load %arg5[%c0_9, %c0_10] : memref<8x128xf32, #tpu.memory_space<vmem>>, vector<8x128xf32>
      tpu.vector_store %arg5[%c0_9, %c0_10], %9 {strides = array<i32>} : memref<8x128xf32, #tpu.memory_space<vmem>>, vector<8x128xf32>,
    } else {
    }
    %c0 = arith.constant 0 : index
    %c0_1 = arith.constant 0 : index
    %3 = vector.load %arg5[%c0, %c0_1] : memref<8x128xf32, #tpu.memory_space<vmem>>, vector<8x128xf32>
    %c0_2 = arith.constant 0 : index
    %c0_3 = arith.constant 0 : index
    %4 = vector.load %arg3[%c0_2, %c0_3] : memref<8x128xf32, #tpu.memory_space<vmem>>, vector<8x128xf32>
    %c0_4 = arith.constant 0 : index
    %c0_5 = arith.constant 0 : index
    %5 = vector.load %arg4[%c0_4, %c0_5] : memref<128x128xf32, #tpu.memory_space<vmem>>, vector<128x128xf32>
    %cst = arith.constant dense<0.000000e+00> : vector<8x128xf32>
    %6 = tpu.matmul %4, %5, %cst {dimension_numbers = #tpu.dot_dimension_numbers<[1], [0], [0], [1], [0, 0, 1, 1], [], []>} : vector<8x128xf32>, vector<128x128xf32>, vector<8x128xf32> -> vector<8x128xf32>
    %7 = arith.addf %3, %6 : vector<8x128xf32>
    %c0_6 = arith.constant 0 : index
    %c0_7 = arith.constant 0 : index
    %8 = vector.load %arg5[%c0_6, %c0_7] : memref<8x128xf32, #tpu.memory_space<vmem>>, vector<8x128xf32>
    tpu.vector_store %arg5[%c0_6, %c0_7], %7 {strides = array<i32>} : memref<8x128xf32, #tpu.memory_space<vmem>>, vector<8x128xf32>,
    return
  }
  func.func @transform_0(%arg0: i32, %arg1: i32, %arg2: i32) -> (i32, i32) {
    %c0_i32 = arith.constant 0 : i32
    return %arg0, %arg2 : i32, i32
  }
  func.func @transform_1(%arg0: i32, %arg1: i32, %arg2: i32) -> (i32, i32) {
    %c0_i32 = arith.constant 0 : i32
    return %arg2, %arg1 : i32, i32
  }
  func.func @transform_2(%arg0: i32, %arg1: i32, %arg2: i32) -> (i32, i32) {
    %c0_i32 = arith.constant 0 : i32
    return %arg0, %arg1 : i32, i32
  }
}

</mosaic_0001>

<bundles_post_ra>
// kernel: tpu_custom_call.1
= control target key start
LH: loop header
LB: loop body
LE: loop exit
PB: predicated region body
PF: predicated region fallthrough
CT: control target
= control target key end

     0   :  { %s1289_s0 = inlined_call_operand.hbm [shape: f32[16,256], index: 0, kind: input, shape index: {}]   ;;  %s1290_s1 = inlined_call_operand.hbm [shape: f32[256,128], index: 1, kind: input, shape index: {}]   ;;  %s1291_s2 = inlined_call_operand.hbm [shape: f32[16,128], index: 2, kind: output, shape index: {}]  }
   0x1   :  { %1298 = sst [smem:[#allocation17_spill]] %s1289_s0 }
   0x2   :  { %7 = vsyncpa [#allocation3], 0 }
   0x3   :  { %9 = vsyncpa [#allocation3 + $0x1], 0 }
   0x4   :  { %10 = vsyncpa [#allocation6], 0 }
   0x5   :  { %12 = vsyncpa [#allocation6 + $0x1], 0 }
   0x6   :  { %13 = vsyncpa [#allocation4], 0 }
   0x7   :  { %15 = vsyncpa [#allocation4 + $0x1], 0  ;;  %s919_s9 = smov 0   ;;  %s921_s10 = smov 0  }
   0x8   :  { %s923_s11 = smov 0   ;;  %s925_s12 = smov 0  }
   0x9   :  { %s927_s13 = smov 0   ;;  %s929_s14 = smov 0  }
   0xa   :  { %s931_s15 = smov 0   ;;  %s933_s16 = smov 0  }
   0xb   :  { %s935_s17 = smov 0   ;;  %s937_s18 = smov 0  }
   0xc   :  { %s939_s19 = smov 0   ;;  %s941_s20 = smov 0  }
   0xd   :  { %s943_s21 = smov 0   ;;  %s945_s22 = smov 0  }
   0xe LB: > { %1299 = sst [smem:[#allocation11_spill]] %s873_s17  ;;  %s450_s23 = sadd.s32 4294967295, %s893_s22   ;;  %s893_s22 = sphi %s945_s22, %s21_s22   ;;  %s889_s21 = sphi %s943_s21, %s1342_s21   ;;  %s885_s20 = sphi %s941_s20, %s1341_s20   ;;  %s881_s19 = sphi %s939_s19, %s1340_s19   ;;  %s877_s18 = sphi %s937_s18, %s1339_s18   ;;  %s873_s17 = sphi %s935_s17, %s1327_s17   ;;  %s869_s16 = sphi %s933_s16, %s1338_s16   ;;  %s865_s15 = sphi %s931_s15, %s1337_s15   ;;  %s861_s14 = sphi %s929_s14, %s1336_s14   ;;  %s857_s13 = sphi %s927_s13, %s1335_s13   ;;  %s853_s12 = sphi %s925_s12, %s1334_s12   ;;  %s849_s11 = sphi %s923_s11, %s1333_s11   ;;  %s845_s10 = sphi %s921_s10, %s1332_s10   ;;  %s841_s9 = sphi %s919_s9, %s1331_s9  }
   0xf   : > { %s33_s25 = sadd.s32 1, %s885_s20  ;;  %s40_s26 = sadd.s32 1, %s889_s21 }
  0x10   : > { %p34_p0 = scmp.ge.s32.totalorder %s33_s25, 2  ;;  %s49_s27 = sadd.s32 1, %s873_s17 }
  0x11   : > { %p56_p1 = scmp.ne.s32.totalorder %s873_s17, %s869_s16  ;;  %p57_p2 = scmp.eq.s32.totalorder %s893_s22, 0 }
  0x12   : > { %s1344_s25 = smov (%p34_p0, %s33_s25), 0  ;;  %s1346_s26 = smov (!%p34_p0, %s40_s26), %s889_s21 }
  0x13   : > { %1300 = sst [smem:[#allocation12_spill]] %s1344_s25  ;;  %s45_s28 = ssub.s32 %s885_s20, %s1344_s25 }
  0x14   : > { %p1002_p3 = por %p57_p2, %p56_p1  ;;  %p42_p4 = scmp.ge.s32.totalorder %s1346_s26, 2 }
  0x15   : > { %p62_p5 = scmp.ne.s32.totalorder %s869_s16, %s865_s15  ;;  %p1009_p6 = scmp.eq.s32.totalorder %s450_s23, 0 }
  0x16   : > { %p75_p7 = scmp.eq.s32.totalorder %s45_s28, 0  ;;  %s1348_s26 = smov (%p42_p4, %s1346_s26), 0 }
  0x17   : > { %1303 = sst [smem:[#allocation13_spill]] %s1348_s26  ;;  %p1017_p8 = por %p1009_p6, %p62_p5 }
  0x18   : > { %s77_s4 = sadd.s32 1, %s861_s14  ;;  %s44_s5 = ssub.s32 %s889_s21, %s1348_s26 }
  0x19   : > { %s1304_s3 = scalar_select %p1017_p8, 1, 0 }
  0x1a   : > { %p84_p9 = scmp.ne.s32.totalorder %s861_s14, %s857_s13  ;;  %s46_s6 = sor.u32 %s45_s28, %s44_s5 }
  0x1b   : > { %p90_p10 = scmp.ne.s32.totalorder %s857_s13, %s853_s12  ;;  %p47_p11 = scmp.eq.s32.totalorder %s46_s6, 0 }
  0x1c   : > { %p1030_p12 = por %p84_p9, %p57_p2  ;;  %p103_p0 = scmp.eq.s32.totalorder %s44_s5, 0 }
  0x1d   : > { %s1035_s8 = scalar_select %p75_p7, %s861_s14, %s77_s4  }
  0x1e   : > { %s1038_s15 = scalar_select %p47_p11, %s873_s17, %s49_s27  }
  0x1f   : > { %1306 = sst [smem:[#allocation14_spill]] %s1035_s8  ;;  %p1042_p13 = por %p90_p10, %p1009_p6 }
  0x20   : > { %1307 = sst [smem:[#allocation15_spill]] %s1038_s15  ;;  %s105_s12 = sadd.s32 1, %s849_s11 }
  0x21   : > { %s1308_s24 = scalar_select %p1042_p13, 1, 0 }
  0x22   : > { %p115_p1 = scmp.ne.s32.totalorder %s849_s11, %s845_s10  ;;  %p116_p2 = scmp.eq.s32.totalorder %s450_s23, 3 }
  0x23   : > { %s1050_s28 = scalar_select %p103_p0, %s849_s11, %s105_s12  }
  0x24   : > { %p121_p4 = scmp.ne.s32.totalorder %s845_s10, %s841_s9  ;;  %s1310_s4 = sadd.s32 4294967294, %s893_s22  }
  0x25   : > { %1309 = sst [smem:[#allocation16_spill]] %s1050_s28  ;;  %p122_p5 = scmp.eq.s32.totalorder %s1310_s4, 3 }
  0x26   : > { %p1058_p7 = por %p116_p2, %p115_p1  ;;  %p563_p6 = scmp.lt.s32.totalorder %s893_s22, 4 }
  0x27   : > { %p1063_p9 = por %p122_p5, %p121_p4  ;;  %s142_s5 = sand.u32 1, %s873_s17  }
  0x28   : > { %s1311_s27 = scalar_select %p1058_p7, 1, 0 }
  0x29   : > { %s1312_s30 = scalar_select %p1063_p9, 1, 0 }
  0x2a   : > { %s454_s6 = sshll.u32 %s142_s5, 3  ;;  %s455_s12 = sshll.u32 %s889_s21, 1 }
  0x2b   : > { %s151_s26 = sadd.s32 %s885_s20, %s455_s12  ;;  %s146_s23 = scalar_lea.vmem [#allocation2], %s454_s6 }
  0x2c   : > { %s155_s25 = sshll.u32 %s146_s23, 4  ;;  %s456_s15 = sshll.u32 %s151_s26, 7  ;;  %s1070_s25 = int_to_ptr.vmem [resolvable:$true] %s155_s25 }
  0x2d   : > { %s1313_s0 = sld [smem:[#allocation17_spill]]  ;;  %p1079_p10 = pnand %p563_p6, %p1002_p3 }
  0x2e   : > { %p1085_p11 = pnand %p563_p6, %p1030_p12  ;;  %s143_s8 = scalar_lea.sflag [#allocation3], %s142_s5 }
  0x2f   : > { %p685_p4 = pneg %p1079_p10 }
  0x33   : > { %s1075_s28 = scalar_lea.hbm %s1313_s0, %s456_s15  ;;  %s688_s7 = scalar_lea.hbm %s1313_s0, 512 }
  0x34   : > { %s683_s15 = scalar_lea.hbm %s1075_s28, 128  ;;  %p689_p12 = scmp.lt.u32.totalorder %s1075_s28, %s1313_s0 }
  0x35   : > { %p684_p2 = scmp.ne.s32.totalorder %s1075_s28, %s683_s15  ;;  %p690_p6 = scmp.lt.u32.totalorder %s688_s7, %s683_s15 }
  0x36   : > { %p692_p1 = scmp.lt.u32.totalorder %s683_s15, %s1075_s28 }
  0x37   : > { %p686_p3 = pnand %p685_p4, %p684_p2  ;;  %p691_p0 = por %p690_p6, %p689_p12 }
  0x39   : > { %p687_p5 = pneg %p686_p3  ;;  %p693_p9 = por %p692_p1, %p691_p0 }
  0x3b   : > { %p694_p7 = pnand %p693_p9, %p687_p5 }
  0x3d   : > { %697 = shalt.err (!%p694_p7)
}
  0x3e   : > { %s698_s5 = scalar_lea.vmem %s1070_s25, 128  ;;  %s895_s4 = smov [#allocation2]  }
  0x3f   : > { %p699_p2 = scmp.ne.s32.totalorder %s1070_s25, %s698_s5  ;;  %s703_s29 = sshll.u32 %s895_s4, 4  ;;  %s704_s29 = int_to_ptr.vmem [resolvable:$false] %s703_s29 }
  0x40   : > { %s705_s6 = scalar_lea.vmem %s704_s29, 256  ;;  %p706_p8 = scmp.lt.s32.totalorder %s1070_s25, %s704_s29 }
  0x41   : > { %p701_p3 = pnand %p699_p2, %p685_p4  ;;  %p707_p12 = scmp.lt.s32.totalorder %s705_s6, %s698_s5 }
  0x43   : > { %p702_p13 = pneg %p701_p3  ;;  %p708_p6 = por %p707_p12, %p706_p8 }
  0x45   : > { %p709_p0 = pnand %p708_p6, %p702_p13 }
  0x47   : > { %712 = shalt.err (!%p709_p0)
}
  0x48   : > { %555 = dma.hbm_to_vmem [thread:$0]  (!%p1079_p10), %s1075_s28, 128, %s1070_s25, %s143_s8  }
  0x49   : > { %p1316_p7 = scmp.lt.s32.totalorder %s893_s22, 5  ;;  %p1317_p9 = scmp.ge.s32.totalorder %s893_s22, 1 }
  0x4a   : > { %s162_s7 = sand.u32 1, %s861_s14   ;;  %s469_s12 = sshll.u32 %s885_s20, 11 }
  0x4b   : > { %p1120_p1 = pnand %p1317_p9, %p1316_p7  ;;  %s457_s23 = sshll.u32 %s162_s7, 7 }
  0x4c   : > { %s1129_s4 = scalar_lea.hbm %s1290_s1, %s469_s12  ;;  %s166_s29 = scalar_lea.vmem [#allocation5], %s457_s23 }
  0x4d   : > { %s174_s25 = sshll.u32 %s166_s29, 4  ;;  %s1133_s28 = scalar_lea.sflag [#allocation6], %s162_s7  ;;  %s1131_s25 = int_to_ptr.vmem [resolvable:$true] %s174_s25 }
  0x4e   : > { %s713_s8 = scalar_lea.hbm %s1129_s4, 2048  ;;  %p715_p13 = pneg %p1085_p11 }
  0x4f   : > { %p714_p8 = scmp.ne.s32.totalorder %s1129_s4, %s713_s8  ;;  %s718_s5 = scalar_lea.hbm %s1290_s1, 4096 }
  0x50   : > { %p719_p5 = scmp.lt.u32.totalorder %s1129_s4, %s1290_s1  ;;  %p720_p2 = scmp.lt.u32.totalorder %s718_s5, %s713_s8 }
  0x51   : > { %p716_p10 = pnand %p715_p13, %p714_p8  ;;  %p722_p12 = scmp.lt.u32.totalorder %s713_s8, %s1129_s4 }
  0x52   : > { %p721_p3 = por %p720_p2, %p719_p5 }
  0x53   : > { %p717_p4 = pneg %p716_p10 }
  0x54   : > { %p723_p6 = por %p722_p12, %p721_p3 }
  0x56   : > { %p724_p0 = pnand %p723_p6, %p717_p4 }
  0x58   : > { %727 = shalt.err (!%p724_p0)
}
  0x59   : > { %s728_s7 = scalar_lea.vmem %s1131_s25, 2048  ;;  %s896_s23 = smov [#allocation5]  }
  0x5a   : > { %p729_p7 = scmp.ne.s32.totalorder %s1131_s25, %s728_s7  ;;  %s733_s29 = sshll.u32 %s896_s23, 4  ;;  %s734_s29 = int_to_ptr.vmem [resolvable:$false] %s733_s29 }
  0x5b   : > { %s735_s0 = scalar_lea.vmem %s734_s29, 4096  ;;  %p736_p10 = scmp.lt.s32.totalorder %s1131_s25, %s734_s29 }
  0x5c   : > { %p731_p9 = pnand %p729_p7, %p715_p13  ;;  %p737_p5 = scmp.lt.s32.totalorder %s735_s0, %s728_s7 }
  0x5e   : > { %p732_p8 = pneg %p731_p9  ;;  %p738_p2 = por %p737_p5, %p736_p10 }
  0x60   : > { %p739_p3 = pnand %p738_p2, %p732_p8 }
  0x62   : > { %742 = shalt.err (!%p739_p3)
}
  0x63   : > { %s897_s8 = smov 128   ;;  %s898_s6 = smov 8  }
  0x64   : > { %558 = dma.hbm_to_vmem [thread:$0]  (!%p1085_p11), %s1129_s4, 2048, %s1131_s25, %s1133_s28, %s897_s8, %s897_s8, %s898_s6  }
  0x65   : > { %186 = sbr.rel (%p1120_p1) target bundleno = 384 (0x180), region = 28  ;;  %s188_s12 = sand.u32 (!%p1120_p1), 1, %s869_s16  }
  0x66   : > { %s1164_s5 = sshll.u32 (!%p1120_p1), %s188_s12, 3  ;;  %s189_s17 = scalar_lea.sflag (!%p1120_p1), [#allocation3], %s188_s12 }
  0x67   : > { %s192_s7 = scalar_lea.vmem (!%p1120_p1), [#allocation2], %s1164_s5  ;;  %p1319_p13 = scmp.ne.s32.totalorder (!%p1120_p1), %s1304_s3, 0 }
  0x6c   : > { %828 = dma.done.wait (%p1319_p13), %s189_s17, 128  }
  0x6d   : > { %830 = vsyncadd (%p1319_p13), %s189_s17, 4294967168  ;;  %s197_s26 = sand.u32 1, %s857_s13   ;;  %p1320_p11 = scmp.ne.s32.totalorder %s1308_s24, 0 }
  0x6e   : > { %s462_s4 = sshll.u32 %s197_s26, 7  ;;  %s198_s25 = scalar_lea.sflag [#allocation6], %s197_s26 }
  0x6f   : > { %s1172_s15 = scalar_lea.vmem [#allocation5], %s462_s4 }
  0x70   : > { %832 = dma.done.wait (%p1320_p11), %s198_s25, 2048  }
  0x71   : > { %834 = vsyncadd (%p1320_p11), %s198_s25, 4294965248  ;;  %s224_s28 = sand.u32 1, %s845_s10   ;;  %p464_p1 = scmp.ne.s32.totalorder %s877_s18, 0 }
  0x72   : > { %s463_s23 = sshll.u32 %s224_s28, 3  ;;  %v899_v0 = vmov (!%p464_p1), 0.0  }
  0x73   : > { %s1181_s29 = scalar_lea.vmem [#allocation7], %s463_s23  ;;  %231 = sbr.rel (%p464_p1) target bundleno = 122 (0x7a), region = 40 }
  0x74   : > { %232 = vst [vmem:[%s1181_s29] sm:$0xff] (!%p464_p1), %v899_v0 }
  0x7a PF: > { %v235_v1 = vld [vmem:[%s1172_s15] sm:$0xff]  ;;  %v236_v2 = vld [vmem:[%s1172_s15 + $0x8] sm:$0xff]  ;;  %v237_v3 = vld [vmem:[%s1172_s15 + $0x10] sm:$0xff]  ;;  %v900_v4 = vmov 0.0|0.0   ;;  %vm901_vm0 = vmmov 0   ;;  %v902_v7 = vmov 0.0  }
  0x7b   : > { %522 = vmatprep.subr.bf16.mxu0 %v900_v4  ;;  %v523_v5 = vpack.c.bf16 %v236_v2, %v235_v1  ;;  %v238_v6 = vld [vmem:[%s1172_s15 + $0x18] sm:$0xff]  ;;  %519 = vmatprep.mubr.msk.f32.mxu0 %vm901_vm0, %v902_v7  ;;  %v239_v9 = vld [vmem:[%s1172_s15 + $0x20] sm:$0xff]  ;;  %v240_v10 = vld [vmem:[%s1172_s15 + $0x28] sm:$0xff]  ;;  %s466_s18 = sshll.u32 %s881_s19, 7  ;;  %s338_s24 = sshll.u32 %s1181_s29, 4  ;;  %s1211_s24 = int_to_ptr.vmem [resolvable:$true] %s338_s24 }
  0x7c   : > { %v526_v8 = vpack.c.bf16 %v238_v6, %v237_v3  ;;  %v529_v11 = vpack.c.bf16 %v240_v10, %v239_v9  ;;  %v241_v12 = vld [vmem:[%s1172_s15 + $0x30] sm:$0xff]  ;;  %v242_v13 = vld [vmem:[%s1172_s15 + $0x38] sm:$0xff]  ;;  %v243_v15 = vld [vmem:[%s1172_s15 + $0x40] sm:$0xff]  ;;  %s1209_s8 = scalar_lea.hbm %s1291_s2, %s466_s18  ;;  %s324_s6 = scalar_lea.sflag [#allocation4], %s224_s28 }
  0x7d   : > { %524 = vmatpush3.bf16.msra.mxu0 %v523_v5  ;;  %v532_v14 = vpack.c.bf16 %v242_v13, %v241_v12  ;;  %v244_v16 = vld [vmem:[%s1172_s15 + $0x48] sm:$0xff]  ;;  %v245_v18 = vld [vmem:[%s1172_s15 + $0x50] sm:$0xff]  ;;  %v246_v19 = vld [vmem:[%s1172_s15 + $0x58] sm:$0xff]  ;;  %s743_s12 = scalar_lea.vmem %s1211_s24, 128  ;;  %p1321_p12 = scmp.ne.s32.totalorder %s1311_s27, 0 }
  0x7e   : > { %525 = vmatprep.subr.bf16.mxu0 %v900_v4  ;;  %v535_v17 = vpack.c.bf16 %v244_v16, %v243_v15  ;;  %v538_v20 = vpack.c.bf16 %v246_v19, %v245_v18  ;;  %v247_v21 = vld [vmem:[%s1172_s15 + $0x60] sm:$0xff]  ;;  %v248_v22 = vld [vmem:[%s1172_s15 + $0x68] sm:$0xff]  ;;  %v249_v24 = vld [vmem:[%s1172_s15 + $0x70] sm:$0xff]  ;;  %p744_p4 = scmp.ne.s32.totalorder %s1211_s24, %s743_s12  ;;  %s903_s19 = smov [#allocation7]  }
  0x7f   : > { %v541_v23 = vpack.c.bf16 %v248_v22, %v247_v21  ;;  %v250_v25 = vld [vmem:[%s1172_s15 + $0x78] sm:$0xff]  ;;  %v233_v28 = vld [vmem:[%s1181_s29] sm:$0xff]  ;;  %s747_s5 = sshll.u32 %s903_s19, 4  ;;  %s748_s5 = int_to_ptr.vmem [resolvable:$false] %s747_s5 }
  0x80   : > { %v544_v26 = vpack.c.bf16 %v250_v25, %v249_v24  ;;  %v234_v27 = vld [vmem:[%s192_s7] sm:$0xff]  ;;  %p745_p6 = pnand %p744_p4, %p1321_p12  ;;  %s749_s17 = scalar_lea.vmem %s748_s5, 256 }
  0x81   : > { %527 = vmatpush3.bf16.msra.mxu0 %v526_v8  ;;  %p750_p7 = scmp.lt.s32.totalorder %s1211_s24, %s748_s5  ;;  %p751_p9 = scmp.lt.s32.totalorder %s749_s17, %s743_s12 }
  0x82   : > { %528 = vmatprep.subr.bf16.mxu0 %v900_v4  ;;  %p746_p0 = pneg %p745_p6 }
  0x83   : > { %p752_p8 = por %p751_p9, %p750_p7 }
  0x85   : > { %530 = vmatpush3.bf16.msra.mxu0 %v529_v11  ;;  %p753_p10 = pnand %p752_p8, %p746_p0 }
  0x86   : > { %531 = vmatprep.subr.bf16.mxu0 %v900_v4 }
  0x89   : > { %533 = vmatpush3.bf16.msra.mxu0 %v532_v14 }
  0x8a   : > { %534 = vmatprep.subr.bf16.mxu0 %v900_v4 }
  0x8d   : > { %536 = vmatpush3.bf16.msra.mxu0 %v535_v17 }
  0x8e   : > { %537 = vmatprep.subr.bf16.mxu0 %v900_v4 }
  0x91   : > { %539 = vmatpush3.bf16.msra.mxu0 %v538_v20 }
  0x92   : > { %540 = vmatprep.subr.bf16.mxu0 %v900_v4 }
  0x95   : > { %542 = vmatpush3.bf16.msra.mxu0 %v541_v23 }
  0x96   : > { %543 = vmatprep.subr.bf16.mxu0 %v900_v4 }
  0x99   : > { %545 = vmatpush3.bf16.msra.mxu0 %v544_v26 }
  0x9c   : > { %520 = vmatmul.mubr.f32.vlgmr.msra.gmra.mrb[0].mxu0 %v234_v27 }
 0x16f   : > { %v317_v29 = vpop.f32.mrb[0].mxu0 }
 0x170   : > { %v321_v30 = vadd.f32 %v317_v29, %v233_v28  ;;  %v521_v31 = vpop.f32.mrb[1].mxu0 }
 0x172   : > { %322 = vst [vmem:[%s1181_s29] sm:$0xff] %v321_v30 }
 0x173   : > { %756 = shalt.err (!%p753_p10)
}
 0x174   : > { %s757_s7 = scalar_lea.hbm %s1209_s8, 128  ;;  %s761_s25 = scalar_lea.hbm %s1291_s2, 256 }
 0x175   : > { %p758_p5 = scmp.ne.s32.totalorder %s1209_s8, %s757_s7  ;;  %p762_p13 = scmp.lt.u32.totalorder %s1209_s8, %s1291_s2 }
 0x176   : > { %p763_p11 = scmp.lt.u32.totalorder %s761_s25, %s757_s7  ;;  %p765_p4 = scmp.lt.u32.totalorder %s757_s7, %s1209_s8 }
 0x177   : > { %p759_p2 = pnand %p758_p5, %p1321_p12 }
 0x178   : > { %p764_p1 = por %p763_p11, %p762_p13 }
 0x179   : > { %p760_p3 = pneg %p759_p2 }
 0x17a   : > { %p766_p6 = por %p765_p4, %p764_p1 }
 0x17c   : > { %p767_p0 = pnand %p766_p6, %p760_p3 }
 0x17e   : > { %770 = shalt.err (!%p767_p0)
}
 0x17f   : > { %550 = dma.vmem_to_hbm [thread:$0]  (%p1321_p12), %s1211_s24, 128, %s1209_s8, %s324_s6  }
 0x180 PF: > { %p564_p7 = scmp.ge.s32.totalorder %s893_s22, 2  ;;  %s350_s23 = sand.u32 1, %s841_s9  }
 0x181   : > { %p1322_p9 = scmp.ne.s32.totalorder %s1312_s30, 0  ;;  %s351_s29 = scalar_lea.sflag [#allocation4], %s350_s23 }
 0x183   : > { %p560_p8 = pnand %p564_p7, %p1322_p9 }
 0x185   : > { %836 = dma.done.wait (!%p560_p8), %s351_s29, 128  }
 0x186   : > { %838 = vsyncadd (!%p560_p8), %s351_s29, 4294967168  ;;  %s21_s22 = sadd.s32 1, %s893_s22   ;;  %s1324_s27 = sld [smem:[#allocation16_spill]] }
 0x187   : > { %p1242_p10 = scmp.ge.s32.totalorder %s21_s22, 6   ;;  %s1325_s24 = sld [smem:[#allocation14_spill]] }
 0x188   : > { %s1326_s3 = sld [smem:[#allocation11_spill]]  ;;  %s1327_s17 = sld [smem:[#allocation15_spill]] }
 0x189   : > { %s1328_s30 = sld [smem:[#allocation12_spill]]  ;;  %s1329_s0 = sld [smem:[#allocation13_spill]] }
 0x18a   : > { %s1331_s9 = smov %s845_s10  ;;  %s1332_s10 = smov %s849_s11 }
 0x18b   : > { %s1334_s12 = smov %s857_s13  ;;  %s1335_s13 = smov %s861_s14 }
 0x18c   : > { %s1333_s11 = smov %s1324_s27  ;;  %s1337_s15 = smov %s869_s16 }
 0x18d   : > { %s1336_s14 = smov %s1325_s24  ;;  %s1339_s18 = smov %s885_s20 }
 0x18e   : > { %s1338_s16 = smov %s1326_s3  ;;  %s1340_s19 = smov %s889_s21 }
 0x18f   : > { %s1341_s20 = smov %s1328_s30  ;;  %s1342_s21 = smov %s1329_s0 }
 0x190   :  { %20 = sbr.rel (!%p1242_p10) target bundleno = 14 (0xe), region = 90 }
 0x197   :  { %356 = vsyncpa [#allocation3], 1 }
 0x198   :  { %358 = vsyncpa [#allocation3 + $0x1], 1 }
 0x199   :  { %359 = vsyncpa [#allocation6], 1 }
 0x19a   :  { %361 = vsyncpa [#allocation6 + $0x1], 1 }
 0x19b   :  { %362 = vsyncpa [#allocation4], 1 }
 0x19c   :  { %364 = vsyncpa [#allocation4 + $0x1], 1 }

</bundles_post_ra>
